<compile_context>
chip_gen: v7x
topology: tpu7x:2x2x1
jax: 0.10.0
libtpu: 0.0.40
codegen_flags: <defaults>
</compile_context>

<pallas_src>
import functools

import jax
import jax.numpy as jnp
from jax import lax
from jax.experimental import pallas as pl
from jax.experimental.pallas import tpu as pltpu


def _round_up(n, m):
    return ((n + m - 1) // m) * m


def _rpn_head_kernel(W, Wb, C, k, N,
                     x_ref, wconv_ref, whead_ref, out_ref, patches_ref):
    # x_ref:       (1, C, Lpad)  zero-margined, width-folded feature rows
    # wconv_ref:   (C, Kc)       [:, :9C] conv weights, [:, 9C] conv bias
    # whead_ref:   (6k, Kh)      [:, :C] fused head weights, [:, C] head bias
    # out_ref:     (1, 8k, N)    fused lane-dense output slab
    # patches_ref: (9C, N)       VMEM scratch holding the im2col operand

    # Column-validity masks emulate SAME zero padding for the dx=0 / dx=2 taps
    # (and mask cross-image horizontal neighbours under width folding).
    lane = lax.broadcasted_iota(jnp.int32, (1, N), 1)
    col = (lane & (W - 1)) if (W & (W - 1)) == 0 else (lane % W)
    left_ok = (col >= 1).astype(jnp.float32)         # tap at x-1 exists
    right_ok = (col <= W - 2).astype(jnp.float32)    # tap at x+1 exists

    # im2col: nine lane-window loads of the zero-margined folded row, written
    # straight into the (9C, N) scratch with sublane-aligned slice stores (no
    # jnp.concatenate copy).  Row order (dy, dx, c) matches the glue-side
    # OIHW -> (C_out, 9*C_in) weight reshape.
    for dy in range(3):
        for dx in range(3):
            start = dy * Wb + dx
            p = x_ref[0, :, start:start + N]          # (C, N)
            if dx == 0:
                p = p * left_ok
            elif dx == 2:
                p = p * right_ok
            r = (dy * 3 + dx) * C
            patches_ref[r:r + C, :] = p

    # 3x3 conv + bias + ReLU: one K=9C matmul, bias comes from the same pack.
    h = jnp.dot(wconv_ref[:, :9 * C], patches_ref[...],
                preferred_element_type=jnp.float32)
    h = jnp.maximum(h + wconv_ref[:, 9 * C:9 * C + 1], 0.0)      # (C, N)

    # Fused 1x1 heads: rows 0:2k give d = cls - partner(cls) directly (the
    # per-anchor roll is folded into the weights in glue); rows 2k:6k = bbox.
    full = jnp.dot(whead_ref[:, :C], h, preferred_element_type=jnp.float32)
    full = full + whead_ref[:, C:C + 1]                          # (6k, N)
    d = full[:2 * k]
    out_ref[0, 0:2 * k] = jnp.minimum(d, 0.0)                    # x - max(pair)
    out_ref[0, 2 * k:4 * k] = jax.nn.sigmoid(d)                  # 2-class softmax
    out_ref[0, 4 * k:8 * k] = full[2 * k:]                       # bbox regression


def _looks_like_v7x():
    try:
        kind = jax.devices()[0].device_kind.lower()
    except Exception:
        return False
    return "v7" in kind


def rpn_head_forward(x_nchw, w_conv, b_conv, w_cls, b_cls, w_bbox, b_bbox, k,
                     fold_batch=None):
    """x_nchw: (B, C, H, W); conv weights in PyTorch OIHW convention."""
    B, C, H, W = x_nchw.shape
    HW = H * W

    # v5e/v6e: single TensorCore -> fold the whole batch onto the lane axis
    # (one grid step).  v7x: 2 TensorCores -> one image per "parallel" step.
    if fold_batch is None:
        fold_batch = not (_looks_like_v7x() and B > 1)
    n_img = B if fold_batch else 1      # images folded per grid step
    G = B // n_img                      # grid size
    assert G * n_img == B

    Wb = n_img * W                      # folded row width
    N = H * Wb                          # lanes per grid step
    margin = Wb + 1
    Lpad = _round_up(N + 2 * margin, 128)

    # Width-fold: (B,C,H,W) -> (G, C, H, n_img, W) -> (G, C, N), then add zero
    # margins so every 3x3 tap is a static lane window of the same row
    # (boundary columns are masked in-kernel).  For n_img == 1 the transpose
    # is a no-op reshape.
    xr = x_nchw.reshape(G, n_img, C, H, W)
    xr = jnp.transpose(xr, (0, 2, 3, 1, 4)).reshape(G, C, N)
    x_wide = jnp.pad(xr, ((0, 0), (0, 0), (margin, Lpad - N - margin)))

    # Conv weight OIHW -> (C_out, 9*C_in), contraction ordered (dy, dx, c_in)
    # to match the in-kernel patch stacking; bias packed as column 9C.
    w2d = jnp.transpose(w_conv, (0, 2, 3, 1)).reshape(C, 9 * C)
    Kc = _round_up(9 * C + 1, 128)
    conv_pack = jnp.zeros((C, Kc), jnp.float32)
    conv_pack = conv_pack.at[:, :9 * C].set(w2d).at[:, 9 * C].set(b_conv)

    # cls head: reorder output channels to [class0 x k, class1 x k], fold the
    # per-anchor partner roll into the weights (d = (w - roll(w)) @ h + ...),
    # fuse with the bbox head, and pack the biases as column C.
    order = jnp.concatenate([jnp.arange(0, 2 * k, 2), jnp.arange(1, 2 * k, 2)])
    wcls = w_cls[:, :, 0, 0][order]                              # (2k, C)
    bcls = b_cls[order]
    wd = wcls - jnp.roll(wcls, k, axis=0)
    bd = bcls - jnp.roll(bcls, k, axis=0)
    whead = jnp.concatenate([wd, w_bbox[:, :, 0, 0]], axis=0)    # (6k, C)
    bhead = jnp.concatenate([bd, b_bbox], axis=0)                # (6k,)
    Kh = _round_up(C + 1, 128)
    head_pack = jnp.zeros((6 * k, Kh), jnp.float32)
    head_pack = head_pack.at[:, :C].set(whead).at[:, C].set(bhead)

    kern = functools.partial(_rpn_head_kernel, W, Wb, C, k, N)

    slab = pl.pallas_call(
        kern,
        out_shape=jax.ShapeDtypeStruct((G, 8 * k, N), jnp.float32),
        grid_spec=pltpu.PrefetchScalarGridSpec(
            num_scalar_prefetch=0,
            grid=(G,),
            in_specs=[
                pl.BlockSpec((1, C, Lpad), lambda g: (g, 0, 0)),
                pl.BlockSpec((C, Kc), lambda g: (0, 0)),
                pl.BlockSpec((6 * k, Kh), lambda g: (0, 0)),
            ],
            out_specs=pl.BlockSpec((1, 8 * k, N), lambda g: (g, 0, 0)),
            scratch_shapes=[pltpu.VMEM((9 * C, N), jnp.float32)],
        ),
        compiler_params=pltpu.CompilerParams(
            dimension_semantics=("parallel",)),
    )(x_wide, conv_pack, head_pack)

    # Un-fold / un-transpose in glue (tiny tensors; kernel stores stayed
    # lane-dense).  Kernel row order: d/softmax = class*k + anchor,
    # bbox = 4*anchor + j; lane order = (y, image, x).
    slab = slab.reshape(G, 8 * k, H, n_img, W)
    slab = jnp.transpose(slab, (0, 3, 1, 2, 4)).reshape(B, 8 * k, HW)
    logits = slab[:, 0:2 * k].reshape(B, 2, k, HW)
    sm = slab[:, 2 * k:4 * k].reshape(B, 2, k, HW)
    bb = slab[:, 4 * k:8 * k].reshape(B, k, 4, HW)
    cls_logits = jnp.transpose(logits, (0, 3, 2, 1)).reshape(B, HW * k, 2)
    cls_softmax = jnp.transpose(sm, (0, 3, 2, 1)).reshape(B, HW * k, 2)
    bbox_reg = jnp.transpose(bb, (0, 3, 1, 2)).reshape(B, HW * k, 4)
    return cls_logits, cls_softmax, bbox_reg


def rpn_head_reference(x, w_conv, b_conv, w_cls, b_cls, w_bbox, b_bbox, k):
    """Pure-JAX reference matching the PyTorch RPNHead.forward exactly."""
    B = x.shape[0]
    dn = ('NCHW', 'OIHW', 'NCHW')
    h = lax.conv_general_dilated(x, w_conv, (1, 1), 'SAME', dimension_numbers=dn)
    h = jnp.maximum(h + b_conv[None, :, None, None], 0.0)
    cls = lax.conv_general_dilated(h, w_cls, (1, 1), 'VALID', dimension_numbers=dn)
    cls = cls + b_cls[None, :, None, None]
    bbox = lax.conv_general_dilated(h, w_bbox, (1, 1), 'VALID', dimension_numbers=dn)
    bbox = bbox + b_bbox[None, :, None, None]
    cls = jnp.transpose(cls, (0, 2, 3, 1)).reshape(B, -1, 2)
    cls = cls - cls.max(axis=2, keepdims=True)
    sm = jax.nn.softmax(cls, axis=2)
    bbox = jnp.transpose(bbox, (0, 2, 3, 1)).reshape(B, -1, 4)
    return cls, sm, bbox


if __name__ == "__main__":
    # config: rpn_hidden=16, kernel_size=3, k=4, rpn_mean=0.0, rpn_std=0.1
    B, C, H, W, k = 2, 16, 16, 16, 4
    rpn_mean, rpn_std = 0.0, 0.1

    key = jax.random.PRNGKey(0)
    kx, kw1, kw2, kw3, kb1, kb2, kb3 = jax.random.split(key, 7)

    x = jax.random.normal(kx, (B, C, H, W), jnp.float32)            # NCHW input
    w_conv = rpn_mean + rpn_std * jax.random.normal(kw1, (C, C, 3, 3), jnp.float32)
    w_cls = rpn_mean + rpn_std * jax.random.normal(kw2, (2 * k, C, 1, 1), jnp.float32)
    w_bbox = rpn_mean + rpn_std * jax.random.normal(kw3, (4 * k, C, 1, 1), jnp.float32)
    # PyTorch inits biases to 0; use small nonzero values to exercise the path.
    b_conv = 0.05 * jax.random.normal(kb1, (C,), jnp.float32)
    b_cls = 0.05 * jax.random.normal(kb2, (2 * k,), jnp.float32)
    b_bbox = 0.05 * jax.random.normal(kb3, (4 * k,), jnp.float32)

    ref_cls, ref_sm, ref_bbox = rpn_head_reference(
        x, w_conv, b_conv, w_cls, b_cls, w_bbox, b_bbox, k)

    # Exercise both the batch-folded (v5e/v6e default) and per-image
    # (v7x default) grids; both use the identical kernel body.
    for fold in (True, False):
        out = rpn_head_forward(x, w_conv, b_conv, w_cls, b_cls,
                               w_bbox, b_bbox, k, fold_batch=fold)
        jax.block_until_ready(out)
        cls_logits, cls_softmax, bbox_reg = out

        assert cls_logits.shape == (B, H * W * k, 2)
        assert cls_softmax.shape == (B, H * W * k, 2)
        assert bbox_reg.shape == (B, H * W * k, 4)
        assert jnp.allclose(cls_logits, ref_cls, atol=1e-4, rtol=1e-3)
        assert jnp.allclose(cls_softmax, ref_sm, atol=1e-5, rtol=1e-3)
        assert jnp.allclose(bbox_reg, ref_bbox, atol=1e-4, rtol=1e-3)

    print("KERNEL_OK")
</pallas_src>

<mosaic_0001>
module attributes {stable_mosaic.version = 11 : i64} {
  func.func @_rpn_head_kernel(%arg0: i32, %arg1: memref<1x16x640xf32, #tpu.memory_space<vmem>>, %arg2: memref<16x256xf32, #tpu.memory_space<vmem>>, %arg3: memref<24x128xf32, #tpu.memory_space<vmem>>, %arg4: memref<1x32x512xf32, #tpu.memory_space<vmem>>, %arg5: memref<144x512xf32, #tpu.memory_space<vmem>>) attributes {dimension_semantics = [#tpu.dimension_semantics<parallel>], iteration_bounds = array<i64: 1>, scalar_prefetch = 0 : i64, scratch_operands = 1 : i64, tpu.core_type = #tpu.core_type<tc>, window_params = [{transform_indices = @transform_0, window_bounds = array<i64: 1, 16, 640>}, {pipeline_mode = #tpu.pipeline_mode<synchronous>, transform_indices = @transform_1, window_bounds = array<i64: 16, 256>}, {pipeline_mode = #tpu.pipeline_mode<synchronous>, transform_indices = @transform_2, window_bounds = array<i64: 24, 128>}, {transform_indices = @transform_3, window_bounds = array<i64: 1, 32, 512>}]} {
    %0 = tpu.iota {dimensions = array<i32: 1>} : vector<1x512xi32>
    %c15_i32 = arith.constant 15 : i32
    %1 = vector.broadcast %c15_i32 : i32 to vector<1x512xi32>
    %2 = arith.andi %0, %1 : vector<1x512xi32>
    %c1_i32 = arith.constant 1 : i32
    %3 = vector.broadcast %c1_i32 : i32 to vector<1x512xi32>
    %4 = arith.cmpi sge, %2, %3 : vector<1x512xi32>
    %5 = arith.extui %4 : vector<1x512xi1> to vector<1x512xi32>
    %6 = arith.sitofp %5 : vector<1x512xi32> to vector<1x512xf32>
    %c14_i32 = arith.constant 14 : i32
    %7 = vector.broadcast %c14_i32 : i32 to vector<1x512xi32>
    %8 = arith.cmpi sle, %2, %7 : vector<1x512xi32>
    %9 = arith.extui %8 : vector<1x512xi1> to vector<1x512xi32>
    %10 = arith.sitofp %9 : vector<1x512xi32> to vector<1x512xf32>
    %c0 = arith.constant 0 : index
    %c0_0 = arith.constant 0 : index
    %c0_1 = arith.constant 0 : index
    %11 = vector.load %arg1[%c0, %c0_0, %c0_1] : memref<1x16x640xf32, #tpu.memory_space<vmem>>, vector<1x16x512xf32>
    %12 = vector.shape_cast %11 : vector<1x16x512xf32> to vector<16x512xf32>
    %13 = vector.broadcast %6 : vector<1x512xf32> to vector<16x512xf32>
    %14 = arith.mulf %12, %13 : vector<16x512xf32>
    %c0_2 = arith.constant 0 : index
    %c0_3 = arith.constant 0 : index
    %15 = vector.load %arg5[%c0_2, %c0_3] : memref<144x512xf32, #tpu.memory_space<vmem>>, vector<16x512xf32>
    tpu.vector_store %arg5[%c0_2, %c0_3], %14 {strides = array<i32>} : memref<144x512xf32, #tpu.memory_space<vmem>>, vector<16x512xf32>,
    %c0_4 = arith.constant 0 : index
    %c0_5 = arith.constant 0 : index
    %c1 = arith.constant 1 : index
    %16 = vector.load %arg1[%c0_4, %c0_5, %c1] : memref<1x16x640xf32, #tpu.memory_space<vmem>>, vector<1x16x512xf32>
    %17 = vector.shape_cast %16 : vector<1x16x512xf32> to vector<16x512xf32>
    %c16 = arith.constant 16 : index
    %c0_6 = arith.constant 0 : index
    %18 = vector.load %arg5[%c16, %c0_6] : memref<144x512xf32, #tpu.memory_space<vmem>>, vector<16x512xf32>
    tpu.vector_store %arg5[%c16, %c0_6], %17 {strides = array<i32>} : memref<144x512xf32, #tpu.memory_space<vmem>>, vector<16x512xf32>,
    %c0_7 = arith.constant 0 : index
    %c0_8 = arith.constant 0 : index
    %c2 = arith.constant 2 : index
    %19 = vector.load %arg1[%c0_7, %c0_8, %c2] : memref<1x16x640xf32, #tpu.memory_space<vmem>>, vector<1x16x512xf32>
    %20 = vector.shape_cast %19 : vector<1x16x512xf32> to vector<16x512xf32>
    %21 = vector.broadcast %10 : vector<1x512xf32> to vector<16x512xf32>
    %22 = arith.mulf %20, %21 : vector<16x512xf32>
    %c32 = arith.constant 32 : index
    %c0_9 = arith.constant 0 : index
    %23 = vector.load %arg5[%c32, %c0_9] : memref<144x512xf32, #tpu.memory_space<vmem>>, vector<16x512xf32>
    tpu.vector_store %arg5[%c32, %c0_9], %22 {strides = array<i32>} : memref<144x512xf32, #tpu.memory_space<vmem>>, vector<16x512xf32>,
    %c0_10 = arith.constant 0 : index
    %c0_11 = arith.constant 0 : index
    %c32_12 = arith.constant 32 : index
    %24 = vector.load %arg1[%c0_10, %c0_11, %c32_12] : memref<1x16x640xf32, #tpu.memory_space<vmem>>, vector<1x16x512xf32>
    %25 = vector.shape_cast %24 : vector<1x16x512xf32> to vector<16x512xf32>
    %26 = vector.broadcast %6 : vector<1x512xf32> to vector<16x512xf32>
    %27 = arith.mulf %25, %26 : vector<16x512xf32>
    %c48 = arith.constant 48 : index
    %c0_13 = arith.constant 0 : index
    %28 = vector.load %arg5[%c48, %c0_13] : memref<144x512xf32, #tpu.memory_space<vmem>>, vector<16x512xf32>
    tpu.vector_store %arg5[%c48, %c0_13], %27 {strides = array<i32>} : memref<144x512xf32, #tpu.memory_space<vmem>>, vector<16x512xf32>,
    %c0_14 = arith.constant 0 : index
    %c0_15 = arith.constant 0 : index
    %c33 = arith.constant 33 : index
    %29 = vector.load %arg1[%c0_14, %c0_15, %c33] : memref<1x16x640xf32, #tpu.memory_space<vmem>>, vector<1x16x512xf32>
    %30 = vector.shape_cast %29 : vector<1x16x512xf32> to vector<16x512xf32>
    %c64 = arith.constant 64 : index
    %c0_16 = arith.constant 0 : index
    %31 = vector.load %arg5[%c64, %c0_16] : memref<144x512xf32, #tpu.memory_space<vmem>>, vector<16x512xf32>
    tpu.vector_store %arg5[%c64, %c0_16], %30 {strides = array<i32>} : memref<144x512xf32, #tpu.memory_space<vmem>>, vector<16x512xf32>,
    %c0_17 = arith.constant 0 : index
    %c0_18 = arith.constant 0 : index
    %c34 = arith.constant 34 : index
    %32 = vector.load %arg1[%c0_17, %c0_18, %c34] : memref<1x16x640xf32, #tpu.memory_space<vmem>>, vector<1x16x512xf32>
    %33 = vector.shape_cast %32 : vector<1x16x512xf32> to vector<16x512xf32>
    %34 = vector.broadcast %10 : vector<1x512xf32> to vector<16x512xf32>
    %35 = arith.mulf %33, %34 : vector<16x512xf32>
    %c80 = arith.constant 80 : index
    %c0_19 = arith.constant 0 : index
    %36 = vector.load %arg5[%c80, %c0_19] : memref<144x512xf32, #tpu.memory_space<vmem>>, vector<16x512xf32>
    tpu.vector_store %arg5[%c80, %c0_19], %35 {strides = array<i32>} : memref<144x512xf32, #tpu.memory_space<vmem>>, vector<16x512xf32>,
    %c0_20 = arith.constant 0 : index
    %c0_21 = arith.constant 0 : index
    %c64_22 = arith.constant 64 : index
    %37 = vector.load %arg1[%c0_20, %c0_21, %c64_22] : memref<1x16x640xf32, #tpu.memory_space<vmem>>, vector<1x16x512xf32>
    %38 = vector.shape_cast %37 : vector<1x16x512xf32> to vector<16x512xf32>
    %39 = vector.broadcast %6 : vector<1x512xf32> to vector<16x512xf32>
    %40 = arith.mulf %38, %39 : vector<16x512xf32>
    %c96 = arith.constant 96 : index
    %c0_23 = arith.constant 0 : index
    %41 = vector.load %arg5[%c96, %c0_23] : memref<144x512xf32, #tpu.memory_space<vmem>>, vector<16x512xf32>
    tpu.vector_store %arg5[%c96, %c0_23], %40 {strides = array<i32>} : memref<144x512xf32, #tpu.memory_space<vmem>>, vector<16x512xf32>,
    %c0_24 = arith.constant 0 : index
    %c0_25 = arith.constant 0 : index
    %c65 = arith.constant 65 : index
    %42 = vector.load %arg1[%c0_24, %c0_25, %c65] : memref<1x16x640xf32, #tpu.memory_space<vmem>>, vector<1x16x512xf32>
    %43 = vector.shape_cast %42 : vector<1x16x512xf32> to vector<16x512xf32>
    %c112 = arith.constant 112 : index
    %c0_26 = arith.constant 0 : index
    %44 = vector.load %arg5[%c112, %c0_26] : memref<144x512xf32, #tpu.memory_space<vmem>>, vector<16x512xf32>
    tpu.vector_store %arg5[%c112, %c0_26], %43 {strides = array<i32>} : memref<144x512xf32, #tpu.memory_space<vmem>>, vector<16x512xf32>,
    %c0_27 = arith.constant 0 : index
    %c0_28 = arith.constant 0 : index
    %c66 = arith.constant 66 : index
    %45 = vector.load %arg1[%c0_27, %c0_28, %c66] : memref<1x16x640xf32, #tpu.memory_space<vmem>>, vector<1x16x512xf32>
    %46 = vector.shape_cast %45 : vector<1x16x512xf32> to vector<16x512xf32>
    %47 = vector.broadcast %10 : vector<1x512xf32> to vector<16x512xf32>
    %48 = arith.mulf %46, %47 : vector<16x512xf32>
    %c128 = arith.constant 128 : index
    %c0_29 = arith.constant 0 : index
    %49 = vector.load %arg5[%c128, %c0_29] : memref<144x512xf32, #tpu.memory_space<vmem>>, vector<16x512xf32>
    tpu.vector_store %arg5[%c128, %c0_29], %48 {strides = array<i32>} : memref<144x512xf32, #tpu.memory_space<vmem>>, vector<16x512xf32>,
    %c0_30 = arith.constant 0 : index
    %c0_31 = arith.constant 0 : index
    %50 = vector.load %arg2[%c0_30, %c0_31] : memref<16x256xf32, #tpu.memory_space<vmem>>, vector<16x144xf32>
    %c0_32 = arith.constant 0 : index
    %c0_33 = arith.constant 0 : index
    %51 = vector.load %arg5[%c0_32, %c0_33] : memref<144x512xf32, #tpu.memory_space<vmem>>, vector<144x512xf32>
    %cst = arith.constant dense<0.000000e+00> : vector<16x512xf32>
    %52 = tpu.matmul %50, %51, %cst {dimension_numbers = #tpu.dot_dimension_numbers<[1], [0], [0], [1], [0, 0, 1, 1], [], []>} : vector<16x144xf32>, vector<144x512xf32>, vector<16x512xf32> -> vector<16x512xf32>
    %c0_34 = arith.constant 0 : index
    %c144 = arith.constant 144 : index
    %53 = vector.load %arg2[%c0_34, %c144] : memref<16x256xf32, #tpu.memory_space<vmem>>, vector<16x1xf32>
    %54 = vector.broadcast %53 : vector<16x1xf32> to vector<16x512xf32>
    %55 = arith.addf %52, %54 : vector<16x512xf32>
    %cst_35 = arith.constant 0.000000e+00 : f32
    %56 = vector.broadcast %cst_35 : f32 to vector<16x512xf32>
    %57 = arith.maximumf %55, %56 : vector<16x512xf32>
    %c0_36 = arith.constant 0 : index
    %c0_37 = arith.constant 0 : index
    %58 = vector.load %arg3[%c0_36, %c0_37] : memref<24x128xf32, #tpu.memory_space<vmem>>, vector<24x16xf32>
    %cst_38 = arith.constant dense<0.000000e+00> : vector<24x512xf32>
    %59 = tpu.matmul %58, %57, %cst_38 {dimension_numbers = #tpu.dot_dimension_numbers<[1], [0], [0], [1], [0, 0, 1, 1], [], []>} : vector<24x16xf32>, vector<16x512xf32>, vector<24x512xf32> -> vector<24x512xf32>
    %c0_39 = arith.constant 0 : index
    %c16_40 = arith.constant 16 : index
    %60 = vector.load %arg3[%c0_39, %c16_40] : memref<24x128xf32, #tpu.memory_space<vmem>>, vector<24x1xf32>
    %61 = vector.broadcast %60 : vector<24x1xf32> to vector<24x512xf32>
    %62 = arith.addf %59, %61 : vector<24x512xf32>
    %63 = vector.extract_strided_slice %62 {offsets = [0, 0], sizes = [8, 512], strides = [1, 1]} : vector<24x512xf32> to vector<8x512xf32>
    %cst_41 = arith.constant 0.000000e+00 : f32
    %64 = vector.broadcast %cst_41 : f32 to vector<8x512xf32>
    %65 = arith.minimumf %63, %64 : vector<8x512xf32>
    %c0_42 = arith.constant 0 : index
    %c0_43 = arith.constant 0 : index
    %c0_44 = arith.constant 0 : index
    %66 = vector.load %arg4[%c0_42, %c0_43, %c0_44] : memref<1x32x512xf32, #tpu.memory_space<vmem>>, vector<1x8x512xf32>
    %67 = vector.shape_cast %66 : vector<1x8x512xf32> to vector<8x512xf32>
    %68 = vector.shape_cast %65 : vector<8x512xf32> to vector<1x8x512xf32>
    tpu.vector_store %arg4[%c0_42, %c0_43, %c0_44], %68 {strides = array<i32>} : memref<1x32x512xf32, #tpu.memory_space<vmem>>, vector<1x8x512xf32>,
    %69 = arith.negf %63 : vector<8x512xf32>
    %70 = math.exp %69 : vector<8x512xf32>
    %cst_45 = arith.constant 1.000000e+00 : f32
    %71 = vector.broadcast %cst_45 : f32 to vector<8x512xf32>
    %72 = arith.addf %71, %70 : vector<8x512xf32>
    %73 = arith.divf %71, %72 : vector<8x512xf32>
    %c0_46 = arith.constant 0 : index
    %c8 = arith.constant 8 : index
    %c0_47 = arith.constant 0 : index
    %74 = vector.load %arg4[%c0_46, %c8, %c0_47] : memref<1x32x512xf32, #tpu.memory_space<vmem>>, vector<1x8x512xf32>
    %75 = vector.shape_cast %74 : vector<1x8x512xf32> to vector<8x512xf32>
    %76 = vector.shape_cast %73 : vector<8x512xf32> to vector<1x8x512xf32>
    tpu.vector_store %arg4[%c0_46, %c8, %c0_47], %76 {strides = array<i32>} : memref<1x32x512xf32, #tpu.memory_space<vmem>>, vector<1x8x512xf32>,
    %77 = vector.extract_strided_slice %62 {offsets = [8, 0], sizes = [16, 512], strides = [1, 1]} : vector<24x512xf32> to vector<16x512xf32>
    %c0_48 = arith.constant 0 : index
    %c16_49 = arith.constant 16 : index
    %c0_50 = arith.constant 0 : index
    %78 = vector.load %arg4[%c0_48, %c16_49, %c0_50] : memref<1x32x512xf32, #tpu.memory_space<vmem>>, vector<1x16x512xf32>
    %79 = vector.shape_cast %78 : vector<1x16x512xf32> to vector<16x512xf32>
    %80 = vector.shape_cast %77 : vector<16x512xf32> to vector<1x16x512xf32>
    tpu.vector_store %arg4[%c0_48, %c16_49, %c0_50], %80 {strides = array<i32>} : memref<1x32x512xf32, #tpu.memory_space<vmem>>, vector<1x16x512xf32>,
    return
  }
  func.func @transform_0(%arg0: i32) -> (i32, i32, i32) {
    %c0_i32 = arith.constant 0 : i32
    %c0_i32_0 = arith.constant 0 : i32
    %c0_i32_1 = arith.constant 0 : i32
    return %arg0, %c0_i32, %c0_i32_0 : i32, i32, i32
  }
  func.func @transform_1(%arg0: i32) -> (i32, i32) {
    %c0_i32 = arith.constant 0 : i32
    %c0_i32_0 = arith.constant 0 : i32
    %c0_i32_1 = arith.constant 0 : i32
    return %c0_i32, %c0_i32_0 : i32, i32
  }
  func.func @transform_2(%arg0: i32) -> (i32, i32) {
    %c0_i32 = arith.constant 0 : i32
    %c0_i32_0 = arith.constant 0 : i32
    %c0_i32_1 = arith.constant 0 : i32
    return %c0_i32, %c0_i32_0 : i32, i32
  }
  func.func @transform_3(%arg0: i32) -> (i32, i32, i32) {
    %c0_i32 = arith.constant 0 : i32
    %c0_i32_0 = arith.constant 0 : i32
    %c0_i32_1 = arith.constant 0 : i32
    return %arg0, %c0_i32, %c0_i32_0 : i32, i32, i32
  }
}

</mosaic_0001>

<bundles_post_ra>
// kernel: tpu_custom_call.1
= control target key start
LH: loop header
LB: loop body
LE: loop exit
PB: predicated region body
PF: predicated region fallthrough
CT: control target
= control target key end

     0   :  { %8 = vsyncpa [#allocation4], 0  ;;  %s2229_s0 = inlined_call_operand.hbm [shape: f32[1,16,640], index: 0, kind: input, shape index: {}]   ;;  %s2230_s1 = inlined_call_operand.hbm [shape: f32[16,256], index: 1, kind: input, shape index: {}]   ;;  %s2231_s2 = inlined_call_operand.hbm [shape: f32[24,128], index: 2, kind: input, shape index: {}]   ;;  %s2232_s3 = inlined_call_operand.hbm [shape: f32[1,32,512], index: 3, kind: output, shape index: {}]  }
   0x1   :  { %9 = vsyncpa [#allocation7], 0 }
   0x2   :  { %10 = vsyncpa [#allocation5], 0  ;;  %s1769_s12 = smov [#allocation6]   ;;  %s1675_s16 = scalar_lea.hbm %s2230_s1, 512 }
   0x3   :  { %s28_s13 = sshll.u32 %s1769_s12, 4  ;;  %p1676_p0 = scmp.ne.s32.totalorder %s2230_s1, %s1675_s16  ;;  %s29_s13 = int_to_ptr.vmem [resolvable:$true] %s28_s13 }
   0x4   :  { %p1679_p1 = scmp.lt.u32.totalorder %s1675_s16, %s2230_s1 }
   0x6   :  { %p1681_p2 = pnand %p1679_p1, %p1676_p0 }
   0x8   :  { %1684 = shalt.err (!%p1681_p2)
}
   0x9   :  { %s1685_s21 = scalar_lea.vmem %s29_s13, 512  ;;  %p1690_p4 = scmp.lt.s32.totalorder %s29_s13, %s29_s13 }
   0xa   :  { %p1686_p3 = scmp.ne.s32.totalorder %s29_s13, %s1685_s21  ;;  %p1691_p5 = scmp.lt.s32.totalorder %s1685_s21, %s1685_s21 }
   0xc   :  { %p1692_p6 = por %p1691_p5, %p1690_p4 }
   0xe   :  { %p1693_p7 = pnand %p1692_p6, %p1686_p3 }
  0x10   :  { %1696 = shalt.err (!%p1693_p7)
}
  0x11   :  { %s1770_s22 = smov 256   ;;  %s1771_s23 = smov 16  }
  0x12   :  { %34 = dma.hbm_to_vmem [thread:$0]  %s2230_s1, 512, %s29_s13, [#allocation7], %s1770_s22, %s1770_s22, %s1771_s23  }
  0x13   :  { %s1772_s26 = smov [#allocation3]   ;;  %s1697_s30 = scalar_lea.hbm %s2229_s0, 1280 }
  0x14   :  { %s16_s27 = sshll.u32 %s1772_s26, 4  ;;  %p1698_p8 = scmp.ne.s32.totalorder %s2229_s0, %s1697_s30  ;;  %s17_s27 = int_to_ptr.vmem [resolvable:$true] %s16_s27 }
  0x15   :  { %p1701_p9 = scmp.lt.u32.totalorder %s1697_s30, %s2229_s0 }
  0x17   :  { %p1703_p10 = pnand %p1701_p9, %p1698_p8 }
  0x19   :  { %1706 = shalt.err (!%p1703_p10)
}
  0x1a   :  { %s1707_s8 = scalar_lea.vmem %s17_s27, 1280  ;;  %p1712_p12 = scmp.lt.s32.totalorder %s17_s27, %s17_s27 }
  0x1b   :  { %p1708_p11 = scmp.ne.s32.totalorder %s17_s27, %s1707_s8  ;;  %p1713_p13 = scmp.lt.s32.totalorder %s1707_s8, %s1707_s8 }
  0x1d   :  { %p1714_p0 = por %p1713_p13, %p1712_p12 }
  0x1f   :  { %p1715_p1 = pnand %p1714_p0, %p1708_p11 }
  0x21   :  { %1718 = shalt.err (!%p1715_p1)
}
  0x22   :  { %s1773_s1 = smov 640   ;;  %s1774_s9 = smov 40  }
  0x23   :  { %22 = dma.hbm_to_vmem [thread:$0]  %s2229_s0, 1280, %s17_s27, [#allocation4], %s1773_s1, %s1773_s1, %s1774_s9  }
  0x24   :  { %s1775_s12 = smov [#allocation8]   ;;  %s1719_s16 = scalar_lea.hbm %s2231_s2, 384 }
  0x25   :  { %s40_s13 = sshll.u32 %s1775_s12, 4  ;;  %p1720_p2 = scmp.ne.s32.totalorder %s2231_s2, %s1719_s16  ;;  %s41_s13 = int_to_ptr.vmem [resolvable:$true] %s40_s13 }
  0x26   :  { %p1723_p3 = scmp.lt.u32.totalorder %s1719_s16, %s2231_s2 }
  0x28   :  { %p1725_p4 = pnand %p1723_p3, %p1720_p2 }
  0x2a   :  { %1728 = shalt.err (!%p1725_p4)
}
  0x2b   :  { %s1729_s21 = scalar_lea.vmem %s41_s13, 384  ;;  %p1734_p6 = scmp.lt.s32.totalorder %s41_s13, %s41_s13 }
  0x2c   :  { %p1730_p5 = scmp.ne.s32.totalorder %s41_s13, %s1729_s21  ;;  %p1735_p7 = scmp.lt.s32.totalorder %s1729_s21, %s1729_s21 }
  0x2e   :  { %p1736_p8 = por %p1735_p7, %p1734_p6 }
  0x30   :  { %p1737_p9 = pnand %p1736_p8, %p1730_p5 }
  0x32   :  { %1740 = shalt.err (!%p1737_p9)
}
  0x33   :  { %s1776_s0 = smov 128   ;;  %s1777_s22 = smov 8  }
  0x34   :  { %46 = dma.hbm_to_vmem [thread:$0]  %s2231_s2, 384, %s41_s13, [#allocation7], %s1776_s0, %s1776_s0, %s1777_s22  }
  0x35   :  { %1763 = dma.done.wait [#allocation4], 1280  }
  0x36   :  { %1764 = vsyncadd [#allocation4], 4294966016  ;;  %v56_v0 = vlaneseq }
  0x37   :  { %1765 = dma.done.wait [#allocation7], 896  }
  0x38   :  { %1766 = vsyncadd [#allocation7], 4294966400  ;;  %v57_v1 = vand.u32 127, %v56_v0  ;;  %v1778_v8 = vmov 0.0   ;;  %s1779_s2 = smov 2   ;;  %s1780_s25 = smov 32  }
  0x39   :  { %s1781_s26 = smov 34   ;;  %s1782_s27 = smov 64   ;;  %v1865_v22 = vld [vmem:[#allocation3 + $0x8] sm:$0xff]  ;;  %v1867_v23 = vld [vmem:[#allocation3 + $0x10] sm:$0xff]  ;;  %v1869_v24 = vld [vmem:[#allocation3 + $0x18] sm:$0xff]  ;;  %vm200_vm8 = vcmask 15360  }
  0x3a   :  { %v58_v2 = vadd.s32 128, %v57_v1  ;;  %v61_v3 = vand.u32 15, %v57_v1  ;;  %v59_v4 = vadd.s32 256, %v57_v1  ;;  %v60_v5 = vadd.s32 384, %v57_v1  ;;  %v1871_v25 = vld [vmem:[#allocation3 + $0x20] sm:$0xff]  ;;  %s1783_s28 = smov 66  }
  0x3b   :  { %v1457_v26 = vpack.i.bf16 %v1867_v23, %v1865_v22  ;;  %v1462_v27 = vpack.i.bf16 %v1871_v25, %v1869_v24  ;;  %v1877_v28 = vld [vmem:[#allocation3 + $0x30] sm:$0xff]  ;;  %v1879_v29 = vld [vmem:[#allocation3 + $0x38] sm:$0xff]  ;;  %v1881_v30 = vld [vmem:[#allocation3 + $0x40] sm:$0xff]  ;;  %s1784_s29 = smov 127   ;;  %s1785_s30 = smov 95   ;;  %vm296_vm9 = vcmask 261120  }
  0x3c   :  { %v62_v6 = vand.u32 15, %v58_v2  ;;  %vm77_vm0 = vcmp.le.s32.totalorder %v61_v3, 14  ;;  %vm65_vm1 = vcmp.ge.s32.totalorder %v61_v3, 1  ;;  %v63_v7 = vand.u32 15, %v59_v4  ;;  %v1883_v31 = vld [vmem:[#allocation3 + $0x48] sm:$0xff]  ;;  %v1889_v34 = vld [vmem:[#allocation3] sm:$0xff] }
  0x3d   :  { %v1284_v9 = vsel %vm77_vm0, 1.0, %v1778_v8  ;;  %v1852_v10 = vsel %vm65_vm1, 1.0, %v1778_v8  ;;  %v64_v11 = vand.u32 15, %v60_v5  ;;  %v1467_v32 = vpack.i.bf16 %v1879_v29, %v1877_v28  ;;  %v1891_v35 = vld [vmem:[#allocation3 + $0x28] sm:$0xff]  ;;  %s1786_s4 = smov 63   ;;  %s1787_s5 = smov 126  }
  0x3e   :  { %vm78_vm2 = vcmp.le.s32.totalorder %v62_v6, 14  ;;  %vm66_vm3 = vcmp.ge.s32.totalorder %v62_v6, 1  ;;  %vm79_vm4 = vcmp.le.s32.totalorder %v63_v7, 14  ;;  %vm67_vm5 = vcmp.ge.s32.totalorder %v63_v7, 1  ;;  %s1788_s6 = smov 96   ;;  %s1789_s7 = smov 94  }
  0x3f   :  { %v1285_v12 = vsel %vm78_vm2, 1.0, %v1778_v8  ;;  %v1281_v13 = vsel %vm66_vm3, 1.0, %v1778_v8  ;;  %vm80_vm6 = vcmp.le.s32.totalorder %v64_v11, 14  ;;  %v1286_v14 = vsel %vm79_vm4, 1.0, %v1778_v8  ;;  %s1790_s8 = smov 62   ;;  %s1792_s1 = smov [#allocation9]  }
  0x40   :  { %v1407_v15 = vpack.i.bf16 %v1285_v12, %v1284_v9  ;;  %v1417_v16 = vpack.i.bf16 %v1281_v13, %v1852_v10  ;;  %v1287_v17 = vsel %vm80_vm6, 1.0, %v1778_v8  ;;  %vm68_vm7 = vcmp.ge.s32.totalorder %v64_v11, 1  ;;  %s1267_s9 = sshll.u32 %s1792_s1, 4  ;;  %s1268_s9 = int_to_ptr.vmem [resolvable:$true] %s1267_s9 }
  0x41   :  { %v1282_v18 = vsel %vm67_vm5, 1.0, %v1778_v8  ;;  %v1283_v19 = vsel %vm68_vm7, 1.0, %v1778_v8  ;;  %v1412_v20 = vpack.i.bf16 %v1287_v17, %v1286_v14  ;;  %v1472_v33 = vpack.i.bf16 %v1883_v31, %v1881_v30  ;;  %s1741_s10 = scalar_lea.vmem %s1268_s9, 2048  ;;  %p1746_p11 = scmp.lt.s32.totalorder %s1268_s9, %s1268_s9 }
  0x42   :  { %1408 = vrot.lane.b32.xlu0 %v1407_v15, %s1779_s2  ;;  %1418 = vrot.lane.b32.xlu1 %v1417_v16, %s1780_s25  ;;  %v1422_v21 = vpack.i.bf16 %v1283_v19, %v1282_v18  ;;  %v1477_v36 = vpack.i.bf16 %v1891_v35, %v1889_v34  ;;  %v98_v37 = vmul.f32 %v1281_v13, %v1865_v22  ;;  %vm453_vm10 = vcmask 277504   ;;  %p1742_p10 = scmp.ne.s32.totalorder %s1268_s9, %s1741_s10  ;;  %p1747_p12 = scmp.lt.s32.totalorder %s1741_s10, %s1741_s10 }
  0x43   :  { %v102_v38 = vmul.f32 %v1281_v13, %v1877_v28  ;;  %v100_v39 = vmul.f32 %v1283_v19, %v1869_v24  ;;  %v104_v40 = vmul.f32 %v1283_v19, %v1881_v30  ;;  %v97_v41 = vmul.f32 %v1852_v10, %v1889_v34 }
  0x44   :  { %v101_v42 = vmul.f32 %v1852_v10, %v1891_v35  ;;  %v99_v43 = vmul.f32 %v1282_v18, %v1867_v23  ;;  %v103_v44 = vmul.f32 %v1282_v18, %v1879_v29  ;;  %vm545_vm11 = vcmask 523264   ;;  %p1748_p13 = por %p1747_p12, %p1746_p11 }
  0x45   :  { %v1302_v45 = vpack.c.bf16 %v102_v38, %v98_v37  ;;  %v1338_v46 = vpack.c.bf16 %v104_v40, %v100_v39  ;;  %vm153_vm12 = vcmask 1039360   ;;  %vm701_vm13 = vcmask 539648  }
  0x46   :  { %1413 = vrot.lane.b32.xlu0 %v1412_v20, %s1779_s2  ;;  %1423 = vrot.lane.b32.xlu1 %v1422_v21, %s1780_s25  ;;  %v1304_v47 = vpack.c.bf16 %v101_v42, %v97_v41  ;;  %v1340_v48 = vpack.c.bf16 %v103_v44, %v99_v43  ;;  %vm861_vm14 = vcmask 130048   ;;  %vm410_vm15 = vcmask 777216   ;;  %p1749_p0 = pnand %p1748_p13, %p1742_p10 }
  0x47   :  { %1303 = vmatprep.subr.bf16.mxu0 %v1302_v45  ;;  %1339 = vmatprep.subr.bf16.mxu1 %v1338_v46  ;;  %vm249_vm0 = vcmask 1031168   ;;  %vm345_vm1 = vcmask 785408   ;;  %vm502_vm2 = vcmask 769024   ;;  %vm658_vm3 = vcmask 515072  }
  0x48   :  { %1305 = vmatpush1.bf16.msra.mxu0 %v1304_v47  ;;  %1341 = vmatpush1.bf16.msra.mxu1 %v1340_v48  ;;  %vm750_vm4 = vcmask 506880  }
  0x4a   :  { %1428 = vrot.lane.b32.xlu0 %v1407_v15, %s1781_s26  ;;  %1433 = vrot.lane.b32.xlu1 %v1412_v20, %s1781_s26 }
  0x4e   :  { %1438 = vrot.lane.b32.xlu0 %v1417_v16, %s1782_s27  ;;  %1443 = vrot.lane.b32.xlu1 %v1422_v21, %s1782_s27 }
  0x52   :  { %1453 = vrot.lane.b32.xlu1 %v1412_v20, %s1783_s28  ;;  %1448 = vrot.lane.b32.xlu0 %v1407_v15, %s1783_s28 }
  0x56   :  { %1458 = vrot.lane.b32.xlu0 %v1457_v26, %s1784_s29  ;;  %1463 = vrot.lane.b32.xlu1 %v1462_v27, %s1784_s29 }
  0x5a   :  { %1468 = vrot.lane.b32.xlu0 %v1467_v32, %s1784_s29  ;;  %1473 = vrot.lane.b32.xlu1 %v1472_v33, %s1784_s29 }
  0x5e   :  { %1478 = vrot.lane.b32.xlu0 %v1477_v36, %s1784_s29  ;;  %1483 = vrot.lane.b32.xlu1 %v1457_v26, %s1785_s30 }
  0x62   :  { %1488 = vrot.lane.b32.xlu0 %v1462_v27, %s1785_s30  ;;  %1493 = vrot.lane.b32.xlu1 %v1467_v32, %s1785_s30 }
  0x66   :  { %1498 = vrot.lane.b32.xlu0 %v1472_v33, %s1785_s30  ;;  %1503 = vrot.lane.b32.xlu1 %v1477_v36, %s1785_s30 }
  0x6a   :  { %1508 = vrot.lane.b32.xlu0 %v1457_v26, %s1786_s4  ;;  %1513 = vrot.lane.b32.xlu1 %v1462_v27, %s1786_s4 }
  0x6e   :  { %1518 = vrot.lane.b32.xlu0 %v1467_v32, %s1786_s4  ;;  %1523 = vrot.lane.b32.xlu1 %v1472_v33, %s1786_s4 }
  0x72   :  { %1528 = vrot.lane.b32.xlu0 %v1477_v36, %s1786_s4 }
  0xb4   :  { %v1409_v49 = vpop.permute.xlu0 %1408  ;;  %v1419_v50 = vpop.permute.xlu1 %1418 }
  0xb5   :  { %v1410_v51 = vunpack.i.l.bf16 %v1409_v49  ;;  %v1420_v52 = vunpack.i.l.bf16 %v1419_v50  ;;  %v1411_v4 = vunpack.i.h.bf16 %v1409_v49  ;;  %v1421_v7 = vunpack.i.h.bf16 %v1419_v50 }
  0xb7   :  { %v209_v53 = vmul.f32 %v1410_v51, %v1889_v34  ;;  %v214_v54 = vmul.f32 %v1410_v51, %v1891_v35  ;;  %v305_v57 = vmul.f32 %v1420_v52, %v1889_v34  ;;  %v310_v58 = vmul.f32 %v1420_v52, %v1891_v35 }
  0xb8   :  { %v1414_v55 = vpop.permute.xlu0 %1413  ;;  %v1424_v56 = vpop.permute.xlu1 %1423  ;;  %v201_v19 = vsel %vm200_vm8, %v1410_v51, %v1411_v4  ;;  %v297_v20 = vsel %vm296_vm9, %v1420_v52, %v1421_v7 }
  0xb9   :  { %v1532_v59 = vpack.i.bf16 %v214_v54, %v209_v53  ;;  %v1537_v60 = vpack.i.bf16 %v310_v58, %v305_v57  ;;  %v1416_v61 = vunpack.i.h.bf16 %v1414_v55  ;;  %v1415_v62 = vunpack.i.l.bf16 %v1414_v55 }
  0xba   :  { %v1425_v14 = vunpack.i.l.bf16 %v1424_v56  ;;  %v1426_v21 = vunpack.i.h.bf16 %v1424_v56  ;;  %v210_v39 = vmul.f32 %v201_v19, %v1865_v22  ;;  %v306_v45 = vmul.f32 %v297_v20, %v1865_v22 }
  0xbb   :  { %1533 = vrot.lane.b32.xlu1 %v1532_v59, %s1787_s5  ;;  %1538 = vrot.lane.b32.xlu0 %v1537_v60, %s1788_s6  ;;  %v203_v2 = vsel %vm200_vm8, %v1415_v62, %v1416_v61  ;;  %v202_v10 = vsel %vm200_vm8, %v1411_v4, %v1415_v62  ;;  %v213_v13 = vmul.f32 %v1416_v61, %v1871_v25 }
  0xbc   :  { %v1429_v63 = vpop.permute.xlu0 %1428  ;;  %v1434_v1 = vpop.permute.xlu1 %1433  ;;  %v212_v12 = vmul.f32 %v203_v2, %v1869_v24  ;;  %v211_v26 = vmul.f32 %v202_v10, %v1867_v23  ;;  %v217_v33 = vmul.f32 %v203_v2, %v1881_v30  ;;  %v218_v36 = vmul.f32 %v1416_v61, %v1883_v31 }
  0xbd   :  { %v1430_v0 = vunpack.i.l.bf16 %v1429_v63  ;;  %v298_v37 = vsel %vm296_vm9, %v1421_v7, %v1425_v14  ;;  %v1431_v38 = vunpack.i.h.bf16 %v1429_v63  ;;  %v299_v42 = vsel %vm296_vm9, %v1425_v14, %v1426_v21 }
  0xbe   :  { %v1557_v32 = vpack.i.bf16 %v213_v13, %v212_v12  ;;  %v1945_v43 = vunpack.i.h.bf16 %v1434_v1  ;;  %v1435_v44 = vunpack.i.l.bf16 %v1434_v1  ;;  %v1552_v46 = vpack.i.bf16 %v211_v26, %v210_v39 }
  0xbf   :  { %v462_v3 = vmul.f32 %v1430_v0, %v1889_v34  ;;  %v467_v6 = vmul.f32 %v1430_v0, %v1891_v35  ;;  %v1567_v47 = vpack.i.bf16 %v218_v36, %v217_v33  ;;  %v216_v48 = vmul.f32 %v202_v10, %v1879_v29 }
  0xc0   :  { %v1913_v5 = vpop.permute.xlu0 %1438  ;;  %v1924_v16 = vpop.permute.xlu1 %1443  ;;  %v307_v49 = vmul.f32 %v298_v37, %v1867_v23  ;;  %v215_v50 = vmul.f32 %v201_v19, %v1877_v28  ;;  %v454_v51 = vsel %vm453_vm10, %v1430_v0, %v1431_v38  ;;  %v308_v52 = vmul.f32 %v299_v42, %v1869_v24 }
  0xc1   :  { %v1917_v9 = vunpack.i.l.bf16 %v1913_v5  ;;  %v1542_v11 = vpack.i.bf16 %v467_v6, %v462_v3  ;;  %v309_v53 = vmul.f32 %v1426_v21, %v1871_v25  ;;  %v455_v56 = vsel %vm453_vm10, %v1431_v38, %v1435_v44 }
  0xc2   :  { %v1958_v57 = vunpack.i.h.bf16 %v1924_v16  ;;  %v311_v58 = vmul.f32 %v297_v20, %v1877_v28  ;;  %v312_v59 = vmul.f32 %v298_v37, %v1879_v29  ;;  %v456_v60 = vsel %vm453_vm10, %v1435_v44, %v1945_v43 }
  0xc3   :  { %v554_v15 = vmul.f32 %v1917_v9, %v1889_v34  ;;  %1543 = vrot.lane.b32.xlu0 %v1542_v11, %s1789_s7  ;;  %v559_v17 = vmul.f32 %v1917_v9, %v1891_v35  ;;  %v1562_v61 = vpack.i.bf16 %v216_v48, %v215_v50  ;;  %v1572_v62 = vpack.i.bf16 %v307_v49, %v306_v45 }
  0xc4   :  { %v1929_v18 = vpop.permute.xlu0 %1448  ;;  %v1940_v40 = vpop.permute.xlu1 %1453  ;;  %v1445_v63 = vunpack.i.l.bf16 %v1924_v16  ;;  %v313_v0 = vmul.f32 %v299_v42, %v1881_v30  ;;  %v314_v1 = vmul.f32 %v1426_v21, %v1883_v31  ;;  %v463_v2 = vmul.f32 %v454_v51, %v1865_v22 }
  0xc5   :  { %v1547_v27 = vpack.i.bf16 %v559_v17, %v554_v15  ;;  %v1577_v3 = vpack.i.bf16 %v309_v53, %v308_v52  ;;  %v464_v4 = vmul.f32 %v455_v56, %v1867_v23  ;;  %v1582_v12 = vpack.i.bf16 %v312_v59, %v311_v58 }
  0xc6   :  { %v548_v11 = vsel %vm545_vm11, %v1445_v63, %v1958_v57  ;;  %v465_v13 = vmul.f32 %v456_v60, %v1869_v24  ;;  %v466_v14 = vmul.f32 %v1945_v43, %v1871_v25  ;;  %v1441_v21 = vunpack.i.h.bf16 %v1913_v5 }
  0xc7   :  { %1548 = vrot.lane.b32.xlu1 %v1547_v27, %s1782_s27  ;;  %1558 = vrot.lane.b32.xlu0 %v1557_v32, %s1787_s5  ;;  %v1587_v33 = vpack.i.bf16 %v314_v1, %v313_v0  ;;  %v1592_v36 = vpack.i.bf16 %v464_v4, %v463_v2  ;;  %v469_v42 = vmul.f32 %v455_v56, %v1879_v29  ;;  %v1455_v56 = vunpack.i.l.bf16 %v1940_v40 }
  0xc8   :  { %v1942_v41 = vpop.permute.xlu0 %1458  ;;  %v1464_v54 = vpop.permute.xlu1 %1463  ;;  %v1597_v39 = vpack.i.bf16 %v466_v14, %v465_v13  ;;  %v557_v44 = vmul.f32 %v548_v11, %v1869_v24  ;;  %v546_v0 = vsel %vm545_vm11, %v1917_v9, %v1441_v21  ;;  %v547_v1 = vsel %vm545_vm11, %v1441_v21, %v1445_v63 }
  0xc9   :  { %v1461_v6 = vunpack.i.h.bf16 %v1942_v41  ;;  %v1460_v7 = vunpack.i.l.bf16 %v1942_v41  ;;  %v1466_v15 = vunpack.i.h.bf16 %v1464_v54  ;;  %v1465_v16 = vunpack.i.l.bf16 %v1464_v54 }
  0xca   :  { %v468_v41 = vmul.f32 %v454_v51, %v1877_v28  ;;  %v558_v51 = vmul.f32 %v1958_v57, %v1871_v25  ;;  %v1451_v2 = vunpack.i.h.bf16 %v1929_v18  ;;  %v555_v63 = vmul.f32 %v546_v0, %v1865_v22 }
  0xcb   :  { %1553 = vrot.lane.b32.xlu1 %v1552_v46, %s1787_s5  ;;  %1568 = vrot.lane.b32.xlu0 %v1567_v47, %s1787_s5  ;;  %v155_v38 = vsel %vm153_vm12, %v1460_v7, %v1461_v6  ;;  %v157_v45 = vsel %vm153_vm12, %v1465_v16, %v1466_v15  ;;  %v156_v52 = vsel %vm153_vm12, %v1461_v6, %v1465_v16 }
  0xcc   :  { %v1469_v55 = vpop.permute.xlu0 %1468  ;;  %v1474_v20 = vpop.permute.xlu1 %1473  ;;  %v1602_v59 = vpack.i.bf16 %v469_v42, %v468_v41  ;;  %v556_v6 = vmul.f32 %v547_v1, %v1867_v23  ;;  %v560_v13 = vmul.f32 %v546_v0, %v1877_v28  ;;  %v561_v14 = vmul.f32 %v547_v1, %v1879_v29 }
  0xcd   :  { %v1471_v17 = vunpack.i.h.bf16 %v1469_v55  ;;  %v1470_v19 = vunpack.i.l.bf16 %v1469_v55  ;;  %v1476_v26 = vunpack.i.h.bf16 %v1474_v20  ;;  %v1475_v27 = vunpack.i.l.bf16 %v1474_v20 }
  0xce   :  { %v1456_v55 = vunpack.i.h.bf16 %v1940_v40  ;;  %v1450_v40 = vunpack.i.l.bf16 %v1929_v18  ;;  %v1622_v20 = vpack.i.bf16 %v561_v14, %v560_v13 }
  0xcf   :  { %1563 = vrot.lane.b32.xlu1 %v1562_v61, %s1787_s5  ;;  %1573 = vrot.lane.b32.xlu0 %v1572_v62, %s1788_s6  ;;  %v159_v5 = vsel %vm153_vm12, %v1470_v19, %v1471_v17  ;;  %v161_v46 = vsel %vm153_vm12, %v1475_v27, %v1476_v26  ;;  %v160_v54 = vsel %vm153_vm12, %v1471_v17, %v1475_v27  ;;  %v776_v26 = vld [vmem:[#allocation6 + $0x8] sm:$0xff] }
  0xd0   :  { %v1479_v10 = vpop.permute.xlu0 %1478  ;;  %v1306_v48 = vpack.c.bf16 %v159_v5, %v155_v38  ;;  %v1342_v49 = vpack.c.bf16 %v161_v46, %v157_v45  ;;  %v1344_v58 = vpack.c.bf16 %v160_v54, %v156_v52  ;;  %v470_v61 = vmul.f32 %v456_v60, %v1881_v30  ;;  %1290 = vmatprep.mubr.msk.f32.mxu1 %vm861_vm14, %v776_v26 }
  0xd1   :  { %v1481_v32 = vunpack.i.h.bf16 %v1479_v10  ;;  %v1480_v37 = vunpack.i.l.bf16 %v1479_v10  ;;  %v471_v62 = vmul.f32 %v1945_v43, %v1883_v31  ;;  %v562_v60 = vmul.f32 %v548_v11, %v1881_v30  ;;  %1288 = vmatprep.mubr.msk.f32.mxu0 %vm861_vm14, %v776_v26 }
  0xd2   :  { %1307 = vmatprep.subr.bf16.mxu0 %v1306_v48  ;;  %1343 = vmatprep.subr.bf16.mxu1 %v1342_v49  ;;  %v563_v43 = vmul.f32 %v1958_v57, %v1883_v31  ;;  %v704_v4 = vsel %vm701_vm13, %v1455_v56, %v1456_v55  ;;  %v702_v18 = vsel %vm701_vm13, %v1450_v40, %v1451_v2 }
  0xd3   :  { %1578 = vrot.lane.b32.xlu1 %v1577_v3, %s1788_s6  ;;  %1583 = vrot.lane.b32.xlu0 %v1582_v12, %s1788_s6  ;;  %v154_v47 = vsel %vm153_vm12, %v1480_v37, %v1460_v7  ;;  %v158_v50 = vsel %vm153_vm12, %v1481_v32, %v1470_v19  ;;  %v1617_v3 = vpack.i.bf16 %v558_v51, %v557_v44  ;;  %v2037_v37 = vld [vmem:[#allocation6 + $0x18] sm:$0xff] }
  0xd4   :  { %v1308_v53 = vpack.c.bf16 %v158_v50, %v154_v47  ;;  %1345 = vmatpush1.bf16.msra.mxu1 %v1344_v58  ;;  %v1607_v9 = vpack.i.bf16 %v471_v62, %v470_v61  ;;  %v703_v7 = vsel %vm701_vm13, %v1451_v2, %v1455_v56  ;;  %v1627_v10 = vpack.i.bf16 %v563_v43, %v562_v60 }
  0xd5   :  { %v713_v11 = vmul.f32 %v704_v4, %v1869_v24  ;;  %v714_v57 = vmul.f32 %v1456_v55, %v1871_v25  ;;  %v1612_v12 = vpack.i.bf16 %v556_v6, %v555_v63  ;;  %v711_v15 = vmul.f32 %v702_v18, %v1865_v22 }
  0xd6   :  { %1309 = vmatpush1.bf16.msra.mxu0 %v1308_v53  ;;  %v712_v16 = vmul.f32 %v703_v7, %v1867_v23  ;;  %v718_v19 = vmul.f32 %v704_v4, %v1881_v30  ;;  %v719_v24 = vmul.f32 %v1456_v55, %v1883_v31  ;;  %v716_v22 = vmul.f32 %v702_v18, %v1877_v28  ;;  %v2040_v28 = vld [vmem:[#allocation8] sm:$0xff] }
  0xd7   :  { %1588 = vrot.lane.b32.xlu1 %v1587_v33, %s1788_s6  ;;  %1593 = vrot.lane.b32.xlu0 %v1592_v36, %s1789_s7  ;;  %v1637_v17 = vpack.i.bf16 %v714_v57, %v713_v11  ;;  %v717_v23 = vmul.f32 %v703_v7, %v1879_v29  ;;  %v710_v31 = vmul.f32 %v1450_v40, %v1889_v34  ;;  %v1791_v33 = vmov 16   ;;  %v2035_v36 = vld [vmem:[#allocation8 + $0x8] sm:$0xff]  ;;  %v2044_v29 = vld [vmem:[#allocation8 + $0x10] sm:$0xff]  ;;  %v2047_v34 = vpop.permute.xlu0 %1488 }
  0xd8   :  { %v1632_v25 = vpack.i.bf16 %v712_v16, %v711_v15  ;;  %v1647_v21 = vpack.i.bf16 %v719_v24, %v718_v19  ;;  %v715_v27 = vmul.f32 %v1450_v40, %v1891_v35  ;;  %1657 = vset.pattern.permute.xlu0 %v1791_v33  ;;  %1658 = vset.pattern.permute.xlu1 %v1791_v33  ;;  %v2049_v35 = vpop.permute.xlu1 %1483  ;;  %v1491_v56 = vunpack.i.h.bf16 %v2047_v34 }
  0xd9   :  { %v1642_v30 = vpack.i.bf16 %v717_v23, %v716_v22  ;;  %v1486_v51 = vunpack.i.h.bf16 %v2049_v35  ;;  %v1485_v53 = vunpack.i.l.bf16 %v2049_v35  ;;  %v1490_v0 = vunpack.i.l.bf16 %v2047_v34 }
  0xda   :  { %v1652_v32 = vpack.i.bf16 %v715_v27, %v710_v31 }
  0xdb   :  { %1598 = vrot.lane.b32.xlu1 %v1597_v39, %s1789_s7  ;;  %1603 = vrot.lane.b32.xlu0 %v1602_v59, %s1789_s7  ;;  %v2051_v38 = vpop.permute.xlu0 %1498  ;;  %v412_v11 = vsel %vm410_vm15, %v1485_v53, %v1486_v51 }
  0xdc   :  { %v2053_v39 = vpop.permute.xlu1 %1493  ;;  %v1501_v40 = vunpack.i.h.bf16 %v2051_v38 }
  0xdd   :  { %v1496_v58 = vunpack.i.h.bf16 %v2053_v39  ;;  %v1495_v59 = vunpack.i.l.bf16 %v2053_v39 }
  0xdf   :  { %1608 = vrot.lane.b32.xlu1 %v1607_v9, %s1789_s7  ;;  %1618 = vrot.lane.b32.xlu0 %v1617_v3, %s1782_s27  ;;  %v2055_v41 = vpop.permute.xlu0 %1508  ;;  %v1500_v3 = vunpack.i.l.bf16 %v2051_v38  ;;  %v416_v57 = vsel %vm410_vm15, %v1495_v59, %v1496_v58 }
  0xe0   :  { %v2057_v42 = vpop.permute.xlu1 %1503 }
  0xe1   :  { %v1506_v4 = vunpack.i.h.bf16 %v2057_v42  ;;  %v1505_v9 = vunpack.i.l.bf16 %v2057_v42  ;;  %v417_v35 = vsel %vm410_vm15, %v1496_v58, %v1500_v3 }
  0xe3   :  { %1613 = vrot.lane.b32.xlu1 %v1612_v12, %s1782_s27  ;;  %1628 = vrot.lane.b32.xlu0 %v1627_v10, %s1782_s27  ;;  %v2059_v44 = vpop.permute.xlu0 %1518  ;;  %v2096_v12 = vsel %vm410_vm15, %v1490_v0, %v1491_v56 }
  0xe4   :  { %v2061_v5 = vpop.permute.xlu1 %1513 }
  0xe7   :  { %1623 = vrot.lane.b32.xlu1 %v1622_v20, %s1782_s27  ;;  %1638 = vrot.lane.b32.xlu0 %v1637_v17, %s1790_s8  ;;  %v2063_v45 = vpop.permute.xlu0 %1528 }
  0xe8   :  { %v2065_v46 = vpop.permute.xlu1 %1523 }
  0xeb   :  { %1633 = vrot.lane.b32.xlu1 %v1632_v25, %s1790_s8  ;;  %1648 = vrot.lane.b32.xlu0 %v1647_v21, %s1790_s8 }
  0xef   :  { %1643 = vrot.lane.b32.xlu1 %v1642_v30, %s1790_s8  ;;  %853 = vperm.xlu0 %1657, %v776_v26  }
  0xf3   :  { %1653 = vrot.lane.b32.xlu1 %v1652_v32, %s1790_s8  ;;  %1038 = vperm.xlu0 %1657, %v2035_v36  }
  0xf7   :  { %858 = vperm.xlu1 %1658, %v2037_v37  }
  0xfb   :  { %1033 = vperm.xlu1 %1658, %v2040_v28  }
  0xff   :  { %1043 = vperm.xlu1 %1658, %v2044_v29  }
 0x12d   :  { %v2067_v47 = vpop.permute.xlu0 %1538  ;;  %v1534_v48 = vpop.permute.xlu1 %1533 }
 0x12e   :  { %v1536_v13 = vunpack.i.h.bf16 %v1534_v48  ;;  %v1535_v14 = vunpack.i.l.bf16 %v1534_v48  ;;  %v1540_v23 = vunpack.i.l.bf16 %v2067_v47  ;;  %v1541_v42 = vunpack.i.h.bf16 %v2067_v47 }
 0x135   :  { %v2069_v49 = vpop.permute.xlu0 %1543 }
 0x139   :  { %v2071_v50 = vpop.permute.xlu1 %1548  ;;  %v1559_v52 = vpop.permute.xlu0 %1558 }
 0x13a   :  { %v1561_v54 = vunpack.i.h.bf16 %v1559_v52  ;;  %v1560_v55 = vunpack.i.l.bf16 %v1559_v52 }
 0x13c   :  { %v253_v63 = vsel %vm249_vm0, %v1560_v55, %v1561_v54  ;;  %v1318_v54 = vpack.c.bf16 %v416_v57, %v412_v11  ;;  %v1511_v57 = vunpack.i.h.bf16 %v2055_v41 }
 0x13d   :  { %v1554_v61 = vpop.permute.xlu1 %1553  ;;  %v1569_v62 = vpop.permute.xlu0 %1568 }
 0x13e   :  { %v1571_v1 = vunpack.i.h.bf16 %v1569_v62  ;;  %v1570_v2 = vunpack.i.l.bf16 %v1569_v62  ;;  %v1556_v60 = vunpack.i.h.bf16 %v1554_v61  ;;  %v1555_v43 = vunpack.i.l.bf16 %v1554_v61 }
 0x13f   :  { %v418_v61 = vsel %vm410_vm15, %v1500_v3, %v1501_v40  ;;  %v411_v40 = vsel %vm410_vm15, %v1505_v9, %v1485_v53 }
 0x140   :  { %v257_v6 = vsel %vm249_vm0, %v1570_v2, %v1571_v1  ;;  %v251_v24 = vsel %vm249_vm0, %v1555_v43, %v1556_v60  ;;  %v252_v20 = vsel %vm249_vm0, %v1556_v60, %v1560_v55  ;;  %v250_v26 = vsel %vm249_vm0, %v1535_v14, %v1555_v43 }
 0x141   :  { %v1564_v18 = vpop.permute.xlu1 %1563  ;;  %v1574_v7 = vpop.permute.xlu0 %1573  ;;  %v1346_v10 = vpack.c.bf16 %v257_v6, %v253_v63  ;;  %v1354_v11 = vpack.c.bf16 %v418_v61, %v2096_v12 }
 0x142   :  { %v1566_v15 = vunpack.i.h.bf16 %v1564_v18  ;;  %v1565_v16 = vunpack.i.l.bf16 %v1564_v18  ;;  %v1576_v17 = vunpack.i.h.bf16 %v1574_v7  ;;  %v1575_v19 = vunpack.i.l.bf16 %v1574_v7 }
 0x143   :  { %1347 = vmatprep.subr.bf16.mxu1 %v1346_v10  ;;  %v415_v18 = vsel %vm410_vm15, %v1506_v4, %v1495_v59  ;;  %v413_v59 = vsel %vm410_vm15, %v1486_v51, %v1490_v0  ;;  %v1546_v51 = vunpack.i.h.bf16 %v2069_v49  ;;  %v1545_v0 = vunpack.i.l.bf16 %v2069_v49 }
 0x144   :  { %v255_v25 = vsel %vm249_vm0, %v1565_v16, %v1566_v15  ;;  %v256_v21 = vsel %vm249_vm0, %v1566_v15, %v1570_v2  ;;  %v254_v22 = vsel %vm249_vm0, %v1536_v13, %v1565_v16  ;;  %v347_v55 = vsel %vm345_vm1, %v1575_v19, %v1576_v17 }
 0x145   :  { %v1579_v30 = vpop.permute.xlu1 %1578  ;;  %v1584_v31 = vpop.permute.xlu0 %1583  ;;  %v1310_v27 = vpack.c.bf16 %v255_v25, %v251_v24  ;;  %v1348_v32 = vpack.c.bf16 %v256_v21, %v252_v20  ;;  %v1312_v33 = vpack.c.bf16 %v254_v22, %v250_v26  ;;  %v346_v56 = vsel %vm345_vm1, %v1540_v23, %v1575_v19 }
 0x146   :  { %v1586_v48 = vunpack.i.h.bf16 %v1584_v31  ;;  %v1585_v52 = vunpack.i.l.bf16 %v1584_v31  ;;  %v1581_v62 = vunpack.i.h.bf16 %v1579_v30  ;;  %v1580_v1 = vunpack.i.l.bf16 %v1579_v30 }
 0x147   :  { %1311 = vmatprep.subr.bf16.mxu0 %v1310_v27  ;;  %1349 = vmatpush1.bf16.msra.mxu1 %v1348_v32  ;;  %v1320_v24 = vpack.c.bf16 %v415_v18, %v411_v40  ;;  %v1510_v25 = vunpack.i.l.bf16 %v2055_v41  ;;  %v1516_v23 = vunpack.i.h.bf16 %v2061_v5  ;;  %v1515_v49 = vunpack.i.l.bf16 %v2061_v5 }
 0x148   :  { %1313 = vmatpush1.bf16.msra.mxu0 %v1312_v33  ;;  %v351_v2 = vsel %vm345_vm1, %v1585_v52, %v1586_v48  ;;  %v350_v47 = vsel %vm345_vm1, %v1541_v42, %v1585_v52  ;;  %v349_v4 = vsel %vm345_vm1, %v1580_v1, %v1581_v62  ;;  %v348_v9 = vsel %vm345_vm1, %v1576_v17, %v1580_v1 }
 0x149   :  { %v1589_v60 = vpop.permute.xlu1 %1588  ;;  %v2113_v43 = vpop.permute.xlu0 %1593  ;;  %v1314_v63 = vpack.c.bf16 %v351_v2, %v347_v55  ;;  %v1316_v6 = vpack.c.bf16 %v350_v47, %v346_v56  ;;  %v1356_v32 = vpack.c.bf16 %v417_v35, %v413_v59  ;;  %v1520_v55 = vunpack.i.l.bf16 %v2059_v44 }
 0x14a   :  { %v1591_v7 = vunpack.i.h.bf16 %v1589_v60  ;;  %v1590_v10 = vunpack.i.l.bf16 %v1589_v60  ;;  %v1596_v13 = vunpack.i.h.bf16 %v2113_v43  ;;  %v1595_v14 = vunpack.i.l.bf16 %v2113_v43 }
 0x14b   :  { %1315 = vmatprep.subr.bf16.mxu0 %v1314_v63  ;;  %v1526_v56 = vunpack.i.h.bf16 %v2065_v46  ;;  %v1525_v5 = vunpack.i.l.bf16 %v2065_v46 }
 0x14c   :  { %1317 = vmatpush1.bf16.msra.mxu0 %v1316_v6  ;;  %v353_v53 = vsel %vm345_vm1, %v1590_v10, %v1591_v7  ;;  %v352_v12 = vsel %vm345_vm1, %v1586_v48, %v1590_v10  ;;  %v504_v22 = vsel %vm502_vm2, %v1595_v14, %v1596_v13  ;;  %v503_v39 = vsel %vm502_vm2, %v1545_v0, %v1595_v14 }
 0x14d   :  { %v1599_v15 = vpop.permute.xlu1 %1598  ;;  %v1604_v16 = vpop.permute.xlu0 %1603  ;;  %1319 = vmatprep.subr.bf16.mxu0 %v1318_v54  ;;  %v1350_v19 = vpack.c.bf16 %v353_v53, %v349_v4  ;;  %v1352_v34 = vpack.c.bf16 %v352_v12, %v348_v9  ;;  %v1521_v54 = vunpack.i.h.bf16 %v2059_v44  ;;  %v662_v10 = vsel %vm658_vm3, %v1515_v49, %v1516_v23 }
 0x14e   :  { %v1606_v20 = vunpack.i.h.bf16 %v1604_v16  ;;  %v1605_v17 = vunpack.i.l.bf16 %v1604_v16  ;;  %v1601_v21 = vunpack.i.h.bf16 %v1599_v15  ;;  %v1600_v26 = vunpack.i.l.bf16 %v1599_v15 }
 0x14f   :  { %1351 = vmatprep.subr.bf16.mxu1 %v1350_v19  ;;  %v666_v59 = vsel %vm658_vm3, %v1525_v5, %v1526_v56  ;;  %v664_v4 = vsel %vm658_vm3, %v1520_v55, %v1521_v54  ;;  %v665_v53 = vsel %vm658_vm3, %v1521_v54, %v1525_v5  ;;  %v1531_v9 = vunpack.i.h.bf16 %v2063_v45 }
 0x150   :  { %1321 = vmatpush1.bf16.msra.mxu0 %v1320_v24  ;;  %1353 = vmatpush1.bf16.msra.mxu1 %v1352_v34  ;;  %v508_v38 = vsel %vm502_vm2, %v1605_v17, %v1606_v20  ;;  %v507_v58 = vsel %vm502_vm2, %v1546_v51, %v1605_v17  ;;  %v506_v61 = vsel %vm502_vm2, %v1600_v26, %v1601_v21  ;;  %v1551_v12 = vunpack.i.h.bf16 %v2071_v50 }
 0x151   :  { %v1609_v3 = vpop.permute.xlu1 %1608  ;;  %v1619_v30 = vpop.permute.xlu0 %1618  ;;  %1355 = vmatprep.subr.bf16.mxu1 %v1354_v11  ;;  %v1322_v31 = vpack.c.bf16 %v508_v38, %v504_v22  ;;  %v1324_v27 = vpack.c.bf16 %v507_v58, %v503_v39  ;;  %v505_v1 = vsel %vm502_vm2, %v1596_v13, %v1600_v26  ;;  %v660_v11 = vsel %vm658_vm3, %v1510_v25, %v1511_v57 }
 0x152   :  { %v1611_v33 = vunpack.i.h.bf16 %v1609_v3  ;;  %v1610_v42 = vunpack.i.l.bf16 %v1609_v3  ;;  %v1621_v48 = vunpack.i.h.bf16 %v1619_v30  ;;  %v1620_v52 = vunpack.i.l.bf16 %v1619_v30 }
 0x153   :  { %1323 = vmatprep.subr.bf16.mxu0 %v1322_v31  ;;  %v661_v13 = vsel %vm658_vm3, %v1511_v57, %v1515_v49  ;;  %v1550_v15 = vunpack.i.l.bf16 %v2071_v50  ;;  %v1530_v0 = vunpack.i.l.bf16 %v2063_v45  ;;  %v1366_v45 = vpack.c.bf16 %v666_v59, %v662_v10 }
 0x154   :  { %1325 = vmatpush1.bf16.msra.mxu0 %v1324_v27  ;;  %1357 = vmatpush1.bf16.msra.mxu1 %v1356_v32  ;;  %v510_v62 = vsel %vm502_vm2, %v1610_v42, %v1611_v33  ;;  %v509_v2 = vsel %vm502_vm2, %v1606_v20, %v1610_v42  ;;  %v597_v7 = vsel %vm545_vm11, %v1620_v52, %v1621_v48 }
 0x155   :  { %v1614_v47 = vpop.permute.xlu1 %1613  ;;  %v1629_v60 = vpop.permute.xlu0 %1628  ;;  %v1358_v43 = vpack.c.bf16 %v510_v62, %v506_v61  ;;  %v1360_v63 = vpack.c.bf16 %v509_v2, %v505_v1  ;;  %v1330_v31 = vpack.c.bf16 %v664_v4, %v660_v11  ;;  %v659_v42 = vsel %vm658_vm3, %v1530_v0, %v1510_v25 }
 0x156   :  { %v1631_v6 = vunpack.i.h.bf16 %v1629_v60  ;;  %v1630_v18 = vunpack.i.l.bf16 %v1629_v60  ;;  %v1616_v40 = vunpack.i.h.bf16 %v1614_v47  ;;  %v1615_v46 = vunpack.i.l.bf16 %v1614_v47 }
 0x157   :  { %1359 = vmatprep.subr.bf16.mxu1 %v1358_v43  ;;  %v663_v48 = vsel %vm658_vm3, %v1531_v9, %v1520_v55  ;;  %v1368_v56 = vpack.c.bf16 %v665_v53, %v661_v13 }
 0x158   :  { %1361 = vmatpush1.bf16.msra.mxu1 %v1360_v63  ;;  %v601_v14 = vsel %vm545_vm11, %v1630_v18, %v1631_v6  ;;  %v595_v20 = vsel %vm545_vm11, %v1615_v46, %v1616_v40  ;;  %v596_v17 = vsel %vm545_vm11, %v1616_v40, %v1620_v52  ;;  %v594_v50 = vsel %vm545_vm11, %v1550_v15, %v1615_v46  ;;  %v775_v6 = vld [vmem:[#allocation6] sm:$0xff]  ;;  %v777_v40 = vld [vmem:[#allocation6 + $0x10] sm:$0xff] }
 0x159   :  { %v1624_v16 = vpop.permute.xlu1 %1623  ;;  %v1639_v19 = vpop.permute.xlu0 %1638  ;;  %v1362_v57 = vpack.c.bf16 %v601_v14, %v597_v7  ;;  %v1332_v1 = vpack.c.bf16 %v663_v48, %v659_v42 }
 0x15a   :  { %v1626_v24 = vunpack.i.h.bf16 %v1624_v16  ;;  %v1625_v34 = vunpack.i.l.bf16 %v1624_v16  ;;  %v1641_v35 = vunpack.i.h.bf16 %v1639_v19  ;;  %v1640_v51 = vunpack.i.l.bf16 %v1639_v19 }
 0x15b   :  { %1363 = vmatprep.subr.bf16.mxu1 %v1362_v57 }
 0x15c   :  { %v599_v21 = vsel %vm545_vm11, %v1625_v34, %v1626_v24  ;;  %v600_v26 = vsel %vm545_vm11, %v1626_v24, %v1630_v18  ;;  %v598_v22 = vsel %vm545_vm11, %v1551_v12, %v1625_v34  ;;  %v754_v27 = vsel %vm750_vm4, %v1640_v51, %v1641_v35 }
 0x15d   :  { %v1634_v23 = vpop.permute.xlu1 %1633  ;;  %v1649_v38 = vpop.permute.xlu0 %1648  ;;  %v1326_v39 = vpack.c.bf16 %v599_v21, %v595_v20  ;;  %v1364_v58 = vpack.c.bf16 %v600_v26, %v596_v17  ;;  %v1328_v49 = vpack.c.bf16 %v598_v22, %v594_v50 }
 0x15e   :  { %v1651_v3 = vunpack.i.h.bf16 %v1649_v38  ;;  %v1650_v30 = vunpack.i.l.bf16 %v1649_v38  ;;  %v1636_v32 = vunpack.i.h.bf16 %v1634_v23  ;;  %v1635_v33 = vunpack.i.l.bf16 %v1634_v23 }
 0x15f   :  { %1327 = vmatprep.subr.bf16.mxu0 %v1326_v39  ;;  %1365 = vmatpush1.bf16.msra.mxu1 %v1364_v58 }
 0x160   :  { %1329 = vmatpush1.bf16.msra.mxu0 %v1328_v49  ;;  %1367 = vmatprep.subr.bf16.mxu1 %v1366_v45  ;;  %v758_v52 = vsel %vm750_vm4, %v1650_v30, %v1651_v3  ;;  %v752_v41 = vsel %vm750_vm4, %v1635_v33, %v1636_v32  ;;  %v753_v25 = vsel %vm750_vm4, %v1636_v32, %v1640_v51 }
 0x161   :  { %v1644_v54 = vpop.permute.xlu1 %1643  ;;  %1331 = vmatprep.subr.bf16.mxu0 %v1330_v31  ;;  %v1370_v61 = vpack.c.bf16 %v758_v52, %v754_v27 }
 0x162   :  { %v1646_v5 = vunpack.i.h.bf16 %v1644_v54  ;;  %v1645_v62 = vunpack.i.l.bf16 %v1644_v54 }
 0x163   :  { %1369 = vmatpush1.bf16.msra.mxu1 %v1368_v56 }
 0x164   :  { %1333 = vmatpush1.bf16.msra.mxu0 %v1332_v1  ;;  %1371 = vmatprep.subr.bf16.mxu1 %v1370_v61  ;;  %v756_v44 = vsel %vm750_vm4, %v1645_v62, %v1646_v5  ;;  %v757_v55 = vsel %vm750_vm4, %v1646_v5, %v1650_v30 }
 0x165   :  { %v1654_v2 = vpop.permute.xlu1 %1653  ;;  %v1334_v47 = vpack.c.bf16 %v756_v44, %v752_v41  ;;  %v1372_v60 = vpack.c.bf16 %v757_v55, %v753_v25 }
 0x166   :  { %v1656_v43 = vunpack.i.h.bf16 %v1654_v2  ;;  %v1655_v63 = vunpack.i.l.bf16 %v1654_v2 }
 0x167   :  { %1335 = vmatprep.subr.bf16.mxu0 %v1334_v47  ;;  %1373 = vmatpush1.bf16.msra.mxu1 %v1372_v60 }
 0x168   :  { %v751_v18 = vsel %vm750_vm4, %v1655_v63, %v1635_v33  ;;  %v755_v7 = vsel %vm750_vm4, %v1656_v43, %v1645_v62 }
 0x169   :  { %v1336_v10 = vpack.c.bf16 %v755_v7, %v751_v18 }
 0x16a   :  { %1008 = vmatmul.mubr.f32.vlgmr.msra.gmra.mrb[0].mxu1 %v775_v6 }
 0x16b   :  { %1337 = vmatpush1.bf16.msra.mxu0 %v1336_v10  ;;  %1291 = vmatprep.mubr.msk.f32.mxu1 %vm861_vm14, %v2037_v37 }
 0x16e   :  { %931 = vmatmul.mubr.f32.vlgmr.msra.gmra.mrb[0].mxu0 %v775_v6  ;;  %1014 = vmatmul.mubr.f32.gmra.mrb[2].mxu1 %v777_v40  ;;  %v854_v46 = vpop.permute.xlu0 %853 }
 0x16f   :  { %1289 = vmatprep.mubr.msk.f32.mxu0 %vm861_vm14, %v2037_v37  ;;  %1199 = vmatprep.mubr.f32.mxu1 %v1778_v8 }
 0x172   :  { %937 = vmatmul.mubr.f32.gmra.mrb[2].mxu0 %v777_v40  ;;  %v1039_v27 = vpop.permute.xlu0 %1038 }
 0x173   :  { %1116 = vmatprep.mubr.f32.mxu0 %v1778_v8 }
 0x176   :  { %v859_v4 = vpop.permute.xlu1 %858 }
 0x17a   :  { %v1034_v45 = vpop.permute.xlu1 %1033 }
 0x17e   :  { %v1044_v62 = vpop.permute.xlu1 %1043 }
 0x23d   :  { %v1009_v11 = vpop.f32.mrb[0].mxu1 }
 0x23e   :  { %v1011_v13 = vpop.f32.mrb[1].mxu1  ;;  %v1010_v14 = vadd.f32 %v1009_v11, %v854_v46 }
 0x23f   :  { %v1012_v59 = vadd.f32 %v1011_v13, %v854_v46 }
 0x240   :  { %v1022_v15 = vmax.f32 %v1010_v14, 0.0 }
 0x241   :  { %v932_v53 = vpop.f32.mrb[0].mxu0  ;;  %v1015_v9 = vpop.f32.mrb[2].mxu1  ;;  %v1023_v24 = vmax.f32 %v1012_v59, 0.0 }
 0x242   :  { %v1016_v12 = vadd.f32 %v1015_v9, %v859_v4  ;;  %v934_v16 = vpop.f32.mrb[1].mxu0  ;;  %v1017_v19 = vpop.f32.mrb[3].mxu1  ;;  %v933_v37 = vadd.f32 %v932_v53, %v854_v46 }
 0x243   :  { %v1018_v57 = vadd.f32 %v1017_v19, %v859_v4  ;;  %v935_v35 = vadd.f32 %v934_v16, %v854_v46 }
 0x244   :  { %v1026_v34 = vmax.f32 %v1016_v12, 0.0  ;;  %v1020_v22 = vmax.f32 %v933_v37, 0.0 }
 0x245   :  { %v1027_v51 = vmax.f32 %v1018_v57, 0.0  ;;  %v938_v0 = vpop.f32.mrb[2].mxu0  ;;  %v1021_v38 = vmax.f32 %v935_v35, 0.0 }
 0x246   :  { %v1380_v20 = vpack.c.bf16 %v1026_v34, %v1022_v15  ;;  %v939_v17 = vadd.f32 %v938_v0, %v859_v4  ;;  %v940_v21 = vpop.f32.mrb[3].mxu0 }
 0x247   :  { %v1378_v26 = vpack.c.bf16 %v1027_v51, %v1023_v24  ;;  %v941_v50 = vadd.f32 %v940_v21, %v859_v4 }
 0x248   :  { %v1024_v23 = vmax.f32 %v939_v17, 0.0 }
 0x249   :  { %v1025_v39 = vmax.f32 %v941_v50, 0.0  ;;  %1379 = vmatprep.subr.bf16.mxu1 %v1378_v26 }
 0x24a   :  { %v1376_v58 = vpack.c.bf16 %v1024_v23, %v1020_v22  ;;  %1381 = vmatpush1.bf16.msra.mxu1 %v1380_v20 }
 0x24b   :  { %v1374_v49 = vpack.c.bf16 %v1025_v39, %v1021_v38 }
 0x24d   :  { %1375 = vmatprep.subr.bf16.mxu0 %v1374_v49  ;;  %1295 = vmatmul.mubr.msk.f32.vlgmr.msra.gmra.mrb[4].mxu1 %vm861_vm14, %v2040_v28 }
 0x24e   :  { %1377 = vmatpush1.bf16.msra.mxu0 %v1376_v58  ;;  %1205 = vmatprep.mubr.f32.mxu1 %v1778_v8 }
 0x251   :  { %1292 = vmatmul.mubr.msk.f32.vlgmr.msra.gmra.mrb[4].mxu0 %vm861_vm14, %v2040_v28  ;;  %1296 = vmatmul.mubr.msk.f32.gmra.mrb[6].mxu1 %vm861_vm14, %v2035_v36 }
 0x252   :  { %1122 = vmatprep.mubr.f32.mxu0 %v1778_v8  ;;  %1211 = vmatprep.mubr.f32.mxu1 %v1778_v8 }
 0x255   :  { %1293 = vmatmul.mubr.msk.f32.gmra.mrb[6].mxu0 %vm861_vm14, %v2035_v36  ;;  %1297 = vmatmul.mubr.msk.f32.gmra.mrb[8].mxu1 %vm861_vm14, %v2044_v29 }
 0x256   :  { %1128 = vmatprep.mubr.f32.mxu0 %v1778_v8 }
 0x259   :  { %1294 = vmatmul.mubr.msk.f32.gmra.mrb[8].mxu0 %vm861_vm14, %v2044_v29 }
 0x320   :  { %v1201_v28 = vpop.f32.mrb[4].mxu1 }
 0x321   :  { %v1202_v3 = vadd.f32 %v1201_v28, %v1034_v45  ;;  %v1203_v30 = vpop.f32.mrb[5].mxu1 }
 0x322   :  { %v1204_v31 = vadd.f32 %v1203_v30, %v1034_v45 }
 0x323   :  { %v1220_v32 = vmin.f32 %v1202_v3, 0.0  ;;  %v1300_v33 = vmul.f32 -1.442695, %v1202_v3 }
 0x324   :  { %v1221_v42 = vmin.f32 %v1204_v31, 0.0  ;;  %v1301_v48 = vmul.f32 -1.442695, %v1204_v31  ;;  %v1118_v52 = vpop.f32.mrb[4].mxu0  ;;  %v1207_v36 = vpop.f32.mrb[6].mxu1 }
 0x325   :  { %1224 = vst [vmem:[#allocation9 + $0x10] sm:$0xff] %v1220_v32  ;;  %1659 = vpow2.f32 %v1300_v33  ;;  %v1119_v54 = vadd.f32 %v1118_v52, %v1034_v45  ;;  %v1208_v56 = vadd.f32 %v1207_v36, %v1039_v27  ;;  %v1120_v8 = vpop.f32.mrb[5].mxu0  ;;  %v1209_v61 = vpop.f32.mrb[7].mxu1 }
 0x326   :  { %1225 = vst [vmem:[#allocation9 + $0x18] sm:$0xff] %v1221_v42  ;;  %1661 = vpow2.f32 %v1301_v48  ;;  %v1121_v29 = vadd.f32 %v1120_v8, %v1034_v45  ;;  %v1210_v5 = vadd.f32 %v1209_v61, %v1039_v27 }
 0x327   :  { %v1218_v1 = vmin.f32 %v1119_v54, 0.0  ;;  %v1298_v41 = vmul.f32 -1.442695, %v1119_v54  ;;  %1256 = vst [vmem:[#allocation9 + $0x50] sm:$0xff] %v1208_v56 }
 0x328   :  { %v1219_v44 = vmin.f32 %v1121_v29, 0.0  ;;  %v1299_v25 = vmul.f32 -1.442695, %v1121_v29  ;;  %1257 = vst [vmem:[#allocation9 + $0x58] sm:$0xff] %v1210_v5  ;;  %v1124_v55 = vpop.f32.mrb[6].mxu0  ;;  %v1213_v2 = vpop.f32.mrb[8].mxu1 }
 0x329   :  { %1222 = vst [vmem:[#allocation9] sm:$0xff] %v1218_v1  ;;  %1663 = vpow2.f32 %v1298_v41  ;;  %v1125_v47 = vadd.f32 %v1124_v55, %v1039_v27  ;;  %v1214_v60 = vadd.f32 %v1213_v2, %v1044_v62  ;;  %v1126_v43 = vpop.f32.mrb[7].mxu0  ;;  %v1215_v63 = vpop.f32.mrb[9].mxu1 }
 0x32a   :  { %1223 = vst [vmem:[#allocation9 + $0x8] sm:$0xff] %v1219_v44  ;;  %1665 = vpow2.f32 %v1299_v25  ;;  %v1127_v6 = vadd.f32 %v1126_v43, %v1039_v27  ;;  %v1216_v18 = vadd.f32 %v1215_v63, %v1044_v62 }
 0x32b   :  { %1254 = vst [vmem:[#allocation9 + $0x40] sm:$0xff] %v1125_v47  ;;  %1260 = vst [vmem:[#allocation9 + $0x70] sm:$0xff] %v1214_v60 }
 0x32c   :  { %1255 = vst [vmem:[#allocation9 + $0x48] sm:$0xff] %v1127_v6  ;;  %1261 = vst [vmem:[#allocation9 + $0x78] sm:$0xff] %v1216_v18  ;;  %v1130_v7 = vpop.f32.mrb[8].mxu0 }
 0x32d   :  { %v1131_v10 = vadd.f32 %v1130_v7, %v1044_v62  ;;  %v1132_v40 = vpop.f32.mrb[9].mxu0 }
 0x32e   :  { %v1133_v46 = vadd.f32 %v1132_v40, %v1044_v62 }
 0x32f   :  { %v1660_v11 = vpop.eup %1659  ;;  %1258 = vst [vmem:[#allocation9 + $0x60] sm:$0xff] %v1131_v10 }
 0x330   :  { %v1662_v13 = vpop.eup %1661  ;;  %v1240_v14 = vadd.f32 1.0, %v1660_v11  ;;  %1259 = vst [vmem:[#allocation9 + $0x68] sm:$0xff] %v1133_v46 }
 0x331   :  { %v1241_v59 = vadd.f32 1.0, %v1662_v13 }
 0x332   :  { %1667 = vrcp.f32 %v1240_v14 }
 0x333   :  { %v1664_v4 = vpop.eup %1663  ;;  %1669 = vrcp.f32 %v1241_v59 }
 0x334   :  { %v1666_v53 = vpop.eup %1665  ;;  %v1238_v9 = vadd.f32 1.0, %v1664_v4 }
 0x335   :  { %v1239_v12 = vadd.f32 1.0, %v1666_v53 }
 0x336   :  { %1671 = vrcp.f32 %v1238_v9 }
 0x337   :  { %1673 = vrcp.f32 %v1239_v12 }
 0x33c   :  { %v1668_v15 = vpop.eup %1667 }
 0x33d   :  { %v1670_v16 = vpop.eup %1669  ;;  %1252 = vst [vmem:[#allocation9 + $0x30] sm:$0xff] %v1668_v15 }
 0x33e   :  { %1253 = vst [vmem:[#allocation9 + $0x38] sm:$0xff] %v1670_v16 }
 0x340   :  { %v1672_v19 = vpop.eup %1671 }
 0x341   :  { %v1674_v57 = vpop.eup %1673  ;;  %1250 = vst [vmem:[#allocation9 + $0x20] sm:$0xff] %v1672_v19 }
 0x342   :  { %1251 = vst [vmem:[#allocation9 + $0x28] sm:$0xff] %v1674_v57 }
 0x343   :  { %1752 = shalt.err (!%p1749_p0)
}
 0x344   :  { %s1753_s13 = scalar_lea.hbm %s2232_s3, 2048 }
 0x345   :  { %p1754_p1 = scmp.ne.s32.totalorder %s2232_s3, %s1753_s13  ;;  %p1757_p2 = scmp.lt.u32.totalorder %s1753_s13, %s2232_s3 }
 0x347   :  { %p1759_p3 = pnand %p1757_p2, %p1754_p1 }
 0x349   :  { %1762 = shalt.err (!%p1759_p3)
}
 0x34a   :  { %s1793_s18 = smov 512  }
 0x34b   :  { %1273 = dma.vmem_to_hbm [thread:$0]  %s1268_s9, 2048, %s2232_s3, [#allocation5], %s1793_s18, %s1793_s18, %s1780_s25  }
 0x34c   :  { %1767 = dma.done.wait [#allocation5], 2048  }
 0x34d   :  { %1768 = vsyncadd [#allocation5], 4294965248 }
 0x34e   :  { %1277 = vsyncpa [#allocation4], 1 }
 0x34f   :  { %1278 = vsyncpa [#allocation7], 1 }
 0x350   :  { %1279 = vsyncpa [#allocation5], 1 }

</bundles_post_ra>
